<compile_context>
chip_gen: v7x
topology: tpu7x:2x2x1
jax: 0.10.0
libtpu: 0.0.40
codegen_flags: <defaults>
</compile_context>

<pallas_src>
import jax
import jax.numpy as jnp
from jax import lax
from jax.experimental import pallas as pl
from jax.experimental.pallas import tpu as pltpu

_EPS = 1e-6

# Tiling knobs — conservative across v5e/v6e (128 MiB VMEM) and v7x (64 MiB).
_MAX_TD = 2048                          # feature-tile cap (decouples tb from huge D)
_TB_CAP = 512                           # batch-tile cap
_TARGET_BLOCK_BYTES = 2 * 1024 * 1024   # per-input, per-step HBM block target
_VMEM_LIMIT_BYTES = 48 * 1024 * 1024    # scoped VMEM limit (fits v7x physical 64 MiB)


def _cosine_kernel(x1_ref, x2_ref, o_ref, dot_acc, w1_acc, w2_acc):
    k = pl.program_id(1)  # feature (reduction) axis — last in grid, "arbitrary"

    @pl.when(k == 0)
    def _init():
        dot_acc[...] = jnp.zeros_like(dot_acc)
        w1_acc[...] = jnp.zeros_like(w1_acc)
        w2_acc[...] = jnp.zeros_like(w2_acc)

    x1 = x1_ref[...].astype(jnp.float32)
    x2 = x2_ref[...].astype(jnp.float32)

    dot_acc[...] += jnp.sum(x1 * x2, axis=1, keepdims=True)
    w1_acc[...] += jnp.sum(x1 * x1, axis=1, keepdims=True)
    w2_acc[...] += jnp.sum(x2 * x2, axis=1, keepdims=True)

    @pl.when(k == pl.num_programs(1) - 1)
    def _finalize():
        # Clamp the product of squared norms (PyTorch ATen semantics) and use
        # rsqrt so the transcendental goes to the EUP slot (no VPU divide).
        denom_sq = jnp.maximum(w1_acc[...] * w2_acc[...], _EPS * _EPS)
        o_ref[...] = (dot_acc[...] * lax.rsqrt(denom_sq)).astype(o_ref.dtype)


def _round_up(x: int, m: int) -> int:
    return ((x + m - 1) // m) * m


def cosine_similarity_score(x1: jax.Array, x2: jax.Array) -> jax.Array:
    """Cosine similarity along axis 1 (eps=1e-6). Inputs [B, D] -> output [B]."""
    assert x1.ndim == 2 and x1.shape == x2.shape, "expect matching [B, D] inputs"
    B, D = x1.shape
    out_dtype = jnp.result_type(x1.dtype, x2.dtype)
    itemsize = max(jnp.dtype(x1.dtype).itemsize, jnp.dtype(x2.dtype).itemsize)

    # Feature tile: whole D if it fits, else fixed lane-aligned chunks. Zero
    # padding of the reduction axis does not change any of the three sums.
    td = D if D <= _MAX_TD else _MAX_TD
    Dp = _round_up(D, td)

    # Batch tile: as large as possible while keeping per-step double-buffered
    # input blocks (2 inputs x 2 buffers) plus in-kernel f32 temporaries well
    # inside VMEM on every TPU generation. Zero padded batch rows produce 0
    # (clamped denominator) and are sliced off below.
    tb = max(8, min(_TB_CAP, (_TARGET_BLOCK_BYTES // (td * itemsize)) // 8 * 8))
    tb = min(tb, _round_up(B, 8))
    Bp = _round_up(B, tb)

    if (Bp, Dp) != (B, D):
        pad = ((0, Bp - B), (0, Dp - D))
        x1 = jnp.pad(x1, pad)
        x2 = jnp.pad(x2, pad)

    grid = (Bp // tb, Dp // td)  # batch (parallel, megacore-shardable), feature (reduction)

    out = pl.pallas_call(
        _cosine_kernel,
        out_shape=jax.ShapeDtypeStruct((Bp, 1), out_dtype),
        grid_spec=pltpu.PrefetchScalarGridSpec(
            num_scalar_prefetch=0,
            grid=grid,
            in_specs=[
                pl.BlockSpec((tb, td), lambda i, k: (i, k)),
                pl.BlockSpec((tb, td), lambda i, k: (i, k)),
            ],
            out_specs=pl.BlockSpec((tb, 1), lambda i, k: (i, 0)),
            scratch_shapes=[
                pltpu.VMEM((tb, 1), jnp.float32),  # dot accumulator
                pltpu.VMEM((tb, 1), jnp.float32),  # ||x1||^2 accumulator
                pltpu.VMEM((tb, 1), jnp.float32),  # ||x2||^2 accumulator
            ],
        ),
        compiler_params=pltpu.CompilerParams(
            dimension_semantics=("parallel", "arbitrary"),
            vmem_limit_bytes=_VMEM_LIMIT_BYTES,
        ),
    )(x1, x2)
    return out[:B, 0]


def _reference(x1, x2):
    x1 = x1.astype(jnp.float32)
    x2 = x2.astype(jnp.float32)
    w12 = jnp.sum(x1 * x2, axis=1)
    w1 = jnp.sum(x1 * x1, axis=1)
    w2 = jnp.sum(x2 * x2, axis=1)
    return w12 / jnp.sqrt(jnp.maximum(w1 * w2, _EPS * _EPS))


if __name__ == "__main__":
    key = jax.random.PRNGKey(0)
    k1, k2, k3, k4 = jax.random.split(key, 4)

    # Embedding-like shapes implied by the speaker-score use case.
    B, D = 8, 256
    x1 = jax.random.normal(k1, (B, D), dtype=jnp.float32)
    x2 = jax.random.normal(k2, (B, D), dtype=jnp.float32)
    out = cosine_similarity_score(x1, x2)
    jax.block_until_ready(out)
    ref = _reference(x1, x2)
    assert out.shape == (B,)
    assert jnp.allclose(out, ref, atol=1e-5, rtol=1e-5), (out, ref)

    # Ragged shape — exercises the batch/feature padding path.
    B2, D2 = 10, 300
    y1 = jax.random.normal(k3, (B2, D2), dtype=jnp.float32)
    y2 = jax.random.normal(k4, (B2, D2), dtype=jnp.float32)
    out2 = cosine_similarity_score(y1, y2)
    jax.block_until_ready(out2)
    ref2 = _reference(y1, y2)
    assert out2.shape == (B2,)
    assert jnp.allclose(out2, ref2, atol=1e-5, rtol=1e-5), (out2, ref2)

    print("KERNEL_OK")
</pallas_src>

<mosaic_0001>
module attributes {stable_mosaic.version = 11 : i64} {
  func.func @_cosine_kernel(%arg0: i32, %arg1: i32, %arg2: memref<8x256xf32, #tpu.memory_space<vmem>>, %arg3: memref<8x256xf32, #tpu.memory_space<vmem>>, %arg4: memref<8x1xf32, #tpu.memory_space<vmem>>, %arg5: memref<8x1xf32, #tpu.memory_space<vmem>>, %arg6: memref<8x1xf32, #tpu.memory_space<vmem>>, %arg7: memref<8x1xf32, #tpu.memory_space<vmem>>) attributes {dimension_semantics = [#tpu.dimension_semantics<parallel>, #tpu.dimension_semantics<arbitrary>], iteration_bounds = array<i64: 1, 1>, scalar_prefetch = 0 : i64, scratch_operands = 3 : i64, tpu.core_type = #tpu.core_type<tc>, window_params = [{transform_indices = @transform_0, window_bounds = array<i64: 8, 256>}, {transform_indices = @transform_1, window_bounds = array<i64: 8, 256>}, {transform_indices = @transform_2, window_bounds = array<i64: 8, 1>}]} {
    %c0_i32 = arith.constant 0 : i32
    %0 = arith.cmpi eq, %arg1, %c0_i32 : i32
    %1 = arith.extui %0 : i1 to i32
    %c0_i32_0 = arith.constant 0 : i32
    %2 = arith.cmpi ne, %1, %c0_i32_0 : i32
    scf.if %2 {
      %cst_20 = arith.constant 0.000000e+00 : f32
      %26 = vector.broadcast %cst_20 : f32 to vector<8x1xf32>
      %c0_21 = arith.constant 0 : index
      %c0_22 = arith.constant 0 : index
      %27 = vector.load %arg5[%c0_21, %c0_22] : memref<8x1xf32, #tpu.memory_space<vmem>>, vector<8x1xf32>
      tpu.vector_store %arg5[%c0_21, %c0_22], %26 {strides = array<i32>} : memref<8x1xf32, #tpu.memory_space<vmem>>, vector<8x1xf32>,
      %cst_23 = arith.constant 0.000000e+00 : f32
      %28 = vector.broadcast %cst_23 : f32 to vector<8x1xf32>
      %c0_24 = arith.constant 0 : index
      %c0_25 = arith.constant 0 : index
      %29 = vector.load %arg6[%c0_24, %c0_25] : memref<8x1xf32, #tpu.memory_space<vmem>>, vector<8x1xf32>
      tpu.vector_store %arg6[%c0_24, %c0_25], %28 {strides = array<i32>} : memref<8x1xf32, #tpu.memory_space<vmem>>, vector<8x1xf32>,
      %cst_26 = arith.constant 0.000000e+00 : f32
      %30 = vector.broadcast %cst_26 : f32 to vector<8x1xf32>
      %c0_27 = arith.constant 0 : index
      %c0_28 = arith.constant 0 : index
      %31 = vector.load %arg7[%c0_27, %c0_28] : memref<8x1xf32, #tpu.memory_space<vmem>>, vector<8x1xf32>
      tpu.vector_store %arg7[%c0_27, %c0_28], %30 {strides = array<i32>} : memref<8x1xf32, #tpu.memory_space<vmem>>, vector<8x1xf32>,
    } else {
    }
    %c0 = arith.constant 0 : index
    %c0_1 = arith.constant 0 : index
    %3 = vector.load %arg2[%c0, %c0_1] : memref<8x256xf32, #tpu.memory_space<vmem>>, vector<8x256xf32>
    %c0_2 = arith.constant 0 : index
    %c0_3 = arith.constant 0 : index
    %4 = vector.load %arg3[%c0_2, %c0_3] : memref<8x256xf32, #tpu.memory_space<vmem>>, vector<8x256xf32>
    %c0_4 = arith.constant 0 : index
    %c0_5 = arith.constant 0 : index
    %5 = vector.load %arg5[%c0_4, %c0_5] : memref<8x1xf32, #tpu.memory_space<vmem>>, vector<8x1xf32>
    %6 = arith.mulf %3, %4 : vector<8x256xf32>
    %cst = arith.constant dense<0.000000e+00> : vector<8xf32>
    %7 = vector.multi_reduction <add>, %6, %cst [1] : vector<8x256xf32> to vector<8xf32>
    %8 = vector.shape_cast %7 : vector<8xf32> to vector<8x1xf32>
    %9 = arith.addf %5, %8 : vector<8x1xf32>
    %c0_6 = arith.constant 0 : index
    %c0_7 = arith.constant 0 : index
    %10 = vector.load %arg5[%c0_6, %c0_7] : memref<8x1xf32, #tpu.memory_space<vmem>>, vector<8x1xf32>
    tpu.vector_store %arg5[%c0_6, %c0_7], %9 {strides = array<i32>} : memref<8x1xf32, #tpu.memory_space<vmem>>, vector<8x1xf32>,
    %c0_8 = arith.constant 0 : index
    %c0_9 = arith.constant 0 : index
    %11 = vector.load %arg6[%c0_8, %c0_9] : memref<8x1xf32, #tpu.memory_space<vmem>>, vector<8x1xf32>
    %12 = arith.mulf %3, %3 : vector<8x256xf32>
    %cst_10 = arith.constant dense<0.000000e+00> : vector<8xf32>
    %13 = vector.multi_reduction <add>, %12, %cst_10 [1] : vector<8x256xf32> to vector<8xf32>
    %14 = vector.shape_cast %13 : vector<8xf32> to vector<8x1xf32>
    %15 = arith.addf %11, %14 : vector<8x1xf32>
    %c0_11 = arith.constant 0 : index
    %c0_12 = arith.constant 0 : index
    %16 = vector.load %arg6[%c0_11, %c0_12] : memref<8x1xf32, #tpu.memory_space<vmem>>, vector<8x1xf32>
    tpu.vector_store %arg6[%c0_11, %c0_12], %15 {strides = array<i32>} : memref<8x1xf32, #tpu.memory_space<vmem>>, vector<8x1xf32>,
    %c0_13 = arith.constant 0 : index
    %c0_14 = arith.constant 0 : index
    %17 = vector.load %arg7[%c0_13, %c0_14] : memref<8x1xf32, #tpu.memory_space<vmem>>, vector<8x1xf32>
    %18 = arith.mulf %4, %4 : vector<8x256xf32>
    %cst_15 = arith.constant dense<0.000000e+00> : vector<8xf32>
    %19 = vector.multi_reduction <add>, %18, %cst_15 [1] : vector<8x256xf32> to vector<8xf32>
    %20 = vector.shape_cast %19 : vector<8xf32> to vector<8x1xf32>
    %21 = arith.addf %17, %20 : vector<8x1xf32>
    %c0_16 = arith.constant 0 : index
    %c0_17 = arith.constant 0 : index
    %22 = vector.load %arg7[%c0_16, %c0_17] : memref<8x1xf32, #tpu.memory_space<vmem>>, vector<8x1xf32>
    tpu.vector_store %arg7[%c0_16, %c0_17], %21 {strides = array<i32>} : memref<8x1xf32, #tpu.memory_space<vmem>>, vector<8x1xf32>,
    %c0_i32_18 = arith.constant 0 : i32
    %23 = arith.cmpi eq, %arg1, %c0_i32_18 : i32
    %24 = arith.extui %23 : i1 to i32
    %c0_i32_19 = arith.constant 0 : i32
    %25 = arith.cmpi ne, %24, %c0_i32_19 : i32
    scf.if %25 {
      %c0_20 = arith.constant 0 : index
      %c0_21 = arith.constant 0 : index
      %26 = vector.load %arg6[%c0_20, %c0_21] : memref<8x1xf32, #tpu.memory_space<vmem>>, vector<8x1xf32>
      %c0_22 = arith.constant 0 : index
      %c0_23 = arith.constant 0 : index
      %27 = vector.load %arg7[%c0_22, %c0_23] : memref<8x1xf32, #tpu.memory_space<vmem>>, vector<8x1xf32>
      %28 = arith.mulf %26, %27 : vector<8x1xf32>
      %cst_24 = arith.constant 9.99999996E-13 : f32
      %29 = vector.broadcast %cst_24 : f32 to vector<8x1xf32>
      %30 = arith.maximumf %28, %29 : vector<8x1xf32>
      %c0_25 = arith.constant 0 : index
      %c0_26 = arith.constant 0 : index
      %31 = vector.load %arg5[%c0_25, %c0_26] : memref<8x1xf32, #tpu.memory_space<vmem>>, vector<8x1xf32>
      %32 = math.rsqrt %30 : vector<8x1xf32>
      %33 = arith.mulf %31, %32 : vector<8x1xf32>
      %c0_27 = arith.constant 0 : index
      %c0_28 = arith.constant 0 : index
      %34 = vector.load %arg4[%c0_27, %c0_28] : memref<8x1xf32, #tpu.memory_space<vmem>>, vector<8x1xf32>
      tpu.vector_store %arg4[%c0_27, %c0_28], %33 {strides = array<i32>} : memref<8x1xf32, #tpu.memory_space<vmem>>, vector<8x1xf32>,
    } else {
    }
    return
  }
  func.func @transform_0(%arg0: i32, %arg1: i32) -> (i32, i32) {
    %c0_i32 = arith.constant 0 : i32
    return %arg0, %arg1 : i32, i32
  }
  func.func @transform_1(%arg0: i32, %arg1: i32) -> (i32, i32) {
    %c0_i32 = arith.constant 0 : i32
    return %arg0, %arg1 : i32, i32
  }
  func.func @transform_2(%arg0: i32, %arg1: i32) -> (i32, i32) {
    %c0_i32 = arith.constant 0 : i32
    %c0_i32_0 = arith.constant 0 : i32
    return %arg0, %c0_i32 : i32, i32
  }
}

</mosaic_0001>

<bundles_post_ra>
// kernel: tpu_custom_call.1
= control target key start
LH: loop header
LB: loop body
LE: loop exit
PB: predicated region body
PF: predicated region fallthrough
CT: control target
= control target key end

     0   :  { %7 = vsyncpa [#allocation6], 0  ;;  %s194_s0 = inlined_call_operand.hbm [shape: f32[8,256], index: 0, kind: input, shape index: {}]   ;;  %s195_s1 = inlined_call_operand.hbm [shape: f32[8,256], index: 1, kind: input, shape index: {}]   ;;  %s196_s2 = inlined_call_operand.vmem [shape: f32[8,1], index: 2, kind: output, shape index: {}]  }
   0x1   :  { %8 = vsyncpa [#allocation8], 0  ;;  %s142_s9 = smov [#allocation5]   ;;  %s143_s11 = smov [#allocation7]  }
   0x2   :  { %s15_s10 = sshll.u32 %s142_s9, 4  ;;  %s25_s12 = sshll.u32 %s143_s11, 4  ;;  %s16_s10 = int_to_ptr.vmem [resolvable:$true] %s15_s10  ;;  %s26_s12 = int_to_ptr.vmem [resolvable:$true] %s25_s12 }
   0x3   :  { %s94_s15 = scalar_lea.hbm %s194_s0, 256 }
   0x4   :  { %p95_p0 = scmp.ne.s32.totalorder %s194_s0, %s94_s15  ;;  %p98_p1 = scmp.lt.u32.totalorder %s94_s15, %s194_s0 }
   0x6   :  { %p100_p2 = pnand %p98_p1, %p95_p0 }
   0x8   :  { %103 = shalt.err (!%p100_p2)
}
   0x9   :  { %s104_s20 = scalar_lea.vmem %s16_s10, 256  ;;  %p109_p4 = scmp.lt.s32.totalorder %s16_s10, %s16_s10 }
   0xa   :  { %p105_p3 = scmp.ne.s32.totalorder %s16_s10, %s104_s20  ;;  %p110_p5 = scmp.lt.s32.totalorder %s104_s20, %s104_s20 }
   0xc   :  { %p111_p6 = por %p110_p5, %p109_p4 }
   0xe   :  { %p112_p7 = pnand %p111_p6, %p105_p3 }
  0x10   :  { %115 = shalt.err (!%p112_p7)
}
  0x11   :  { %18 = dma.hbm_to_vmem [thread:$0]  %s194_s0, 256, %s16_s10, [#allocation6]  }
  0x12   :  { %s116_s25 = scalar_lea.hbm %s195_s1, 256 }
  0x13   :  { %p117_p8 = scmp.ne.s32.totalorder %s195_s1, %s116_s25  ;;  %p120_p9 = scmp.lt.u32.totalorder %s116_s25, %s195_s1 }
  0x15   :  { %p122_p10 = pnand %p120_p9, %p117_p8 }
  0x17   :  { %125 = shalt.err (!%p122_p10)
}
  0x18   :  { %s126_s30 = scalar_lea.vmem %s26_s12, 256  ;;  %p131_p12 = scmp.lt.s32.totalorder %s26_s12, %s26_s12 }
  0x19   :  { %p127_p11 = scmp.ne.s32.totalorder %s26_s12, %s126_s30  ;;  %p132_p13 = scmp.lt.s32.totalorder %s126_s30, %s126_s30 }
  0x1b   :  { %p133_p0 = por %p132_p13, %p131_p12 }
  0x1d   :  { %p134_p1 = pnand %p133_p0, %p127_p11 }
  0x1f   :  { %137 = shalt.err (!%p134_p1)
}
  0x20   :  { %28 = dma.hbm_to_vmem [thread:$0]  %s195_s1, 256, %s26_s12, [#allocation8]  }
  0x21   :  { %138 = dma.done.wait [#allocation6], 256  }
  0x22   :  { %139 = vsyncadd [#allocation6], 4294967040 }
  0x23   :  { %140 = dma.done.wait [#allocation8], 256  }
  0x24   :  { %141 = vsyncadd [#allocation8], 4294967040  ;;  %vm39_vm0 = vcmask 7168   ;;  %v144_v0 = vmov 0.0   ;;  %v43_v1 = vld [vmem:[#allocation5] sm:$0xff]  ;;  %v44_v2 = vld [vmem:[#allocation5 + $0x8] sm:$0xff] }
  0x25   :  { %41 = vst.msk [vmem:[#allocation3] sm:$0xff] %vm39_vm0, %v144_v0  ;;  %40 = vst.msk [vmem:[#allocation2] sm:$0xff] %vm39_vm0, %v144_v0  ;;  %v45_v3 = vld [vmem:[#allocation7] sm:$0xff]  ;;  %v57_v4 = vmul.f32 %v43_v1, %v43_v1  ;;  %v58_v5 = vmul.f32 %v44_v2, %v44_v2  ;;  %v46_v6 = vld [vmem:[#allocation7 + $0x8] sm:$0xff] }
  0x26   :  { %42 = vst.msk [vmem:[#allocation4] sm:$0xff] %vm39_vm0, %v144_v0  ;;  %v65_v7 = vmul.f32 %v45_v3, %v45_v3  ;;  %v48_v8 = vmul.f32 %v45_v3, %v43_v1  ;;  %v66_v9 = vmul.f32 %v46_v6, %v46_v6  ;;  %v49_v10 = vmul.f32 %v46_v6, %v44_v2 }
  0x27   :  { %v59_v11 = vadd.f32 %v58_v5, %v57_v4 }
  0x28   :  { %v50_v12 = vadd.f32 %v49_v10, %v48_v8  ;;  %v67_v13 = vadd.f32 %v66_v9, %v65_v7 }
  0x29   :  { %60 = vadd.xlane.f32.xlu0 %v59_v11 }
  0x2a   :  { %51 = vadd.xlane.f32.xlu1 %v50_v12 }
  0x2c   :  { %v56_v14 = vld [vmem:[#allocation3] sm:$0xff]  ;;  %v47_v15 = vld [vmem:[#allocation2] sm:$0xff] }
  0x2d   :  { %68 = vadd.xlane.f32.xlu0 %v67_v13  ;;  %v64_v19 = vld [vmem:[#allocation4] sm:$0xff] }
  0xb6   :  { %v61_v16 = vpop.xlane.xlu0 %60 }
  0xb7   :  { %v62_v17 = vadd.f32 %v61_v16, %v56_v14  ;;  %v52_v18 = vpop.xlane.xlu1 %51 }
  0xb8   :  { %v53_v20 = vadd.f32 %v52_v18, %v47_v15 }
  0xb9   :  { %63 = vst.msk [vmem:[#allocation3] sm:$0xff] %vm39_vm0, %v62_v17 }
  0xba   :  { %v69_v21 = vpop.xlane.xlu0 %68  ;;  %55 = vst.msk [vmem:[#allocation2] sm:$0xff] %vm39_vm0, %v53_v20 }
  0xbb   :  { %v70_v22 = vadd.f32 %v69_v21, %v64_v19 }
  0xbd   :  { %71 = vst.msk [vmem:[#allocation4] sm:$0xff] %vm39_vm0, %v70_v22 }
  0xc0   :  { %v75_v23 = vld [vmem:[#allocation3] sm:$0xff] }
  0xc1   :  { %v79_v27 = vld [vmem:[#allocation2] sm:$0xff] }
  0xc4   :  { %v76_v24 = vld [vmem:[#allocation4] sm:$0xff] }
  0xc5   :  { %v77_v25 = vmul.f32 %v76_v24, %v75_v23 }
  0xc7   :  { %v78_v26 = vmax.f32 %v77_v25, 1e-12 }
  0xc9   :  { %92 = vrsqrt.f32 %v78_v26 }
  0xd3   :  { %v93_v28 = vpop.eup %92 }
  0xd4   :  { %v81_v29 = vmul.f32 %v93_v28, %v79_v27 }
  0xd6   :  { %82 = vst.msk [vmem:[%s196_s2] sm:$0xff] %vm39_vm0, %v81_v29 }
  0xd7   :  { %87 = vsyncpa [#allocation6], 1 }
  0xd8   :  { %88 = vsyncpa [#allocation8], 1 }

</bundles_post_ra>
